<compile_context>
chip_gen: v6e
topology: v6e:2x2x1
jax: 0.10.0
libtpu: 0.0.40
codegen_flags: <defaults>
</compile_context>

<pallas_src>
import functools

import jax
import jax.numpy as jnp
import numpy as np
from jax.experimental import pallas as pl
from jax.experimental.pallas import tpu as pltpu


# ----------------------------------------------------------------------------
# Fused Pallas kernel: upsample+pad (matmul) -> concat -> conv1 -> BN1+ReLU
#                      -> conv2 -> BN2+ReLU, all on (C, N*H*W) layout.
# ----------------------------------------------------------------------------
def _up_fused_kernel(x2_ref, x1_ref, up_ref, mask_ref, w1_ref, w2_ref,
                     g1_ref, b1_ref, g2_ref, b2_ref, o_ref,
                     *, n, h, w, eps):
    m = n * h * w
    mk = mask_ref[...]                                       # (9, M) {0,1}

    # Bilinear x2 upsample (align_corners=True) + F.pad, fused as one matmul
    # with a static block-diagonal interpolation matrix.
    x1u = jnp.dot(x1_ref[...], up_ref[...],
                  preferred_element_type=jnp.float32)        # (C1, M)

    # torch.cat([x2, x1], dim=1)  ->  sublane-axis concat.
    xc = jnp.concatenate([x2_ref[...], x1u], axis=0)         # (Cin, M)

    def conv3x3(x_cm, w_mat):
        # im2col: 9 lane-rolled taps (+ zero-padding boundary mask) stacked on
        # the contraction axis -> a single K = 9*C MXU matmul, lane-dense out.
        taps = []
        for dy in range(3):
            for dx in range(3):
                delta = (dy - 1) * w + (dx - 1)
                if delta == 0:
                    taps.append(x_cm)                        # centre tap
                else:
                    t = 3 * dy + dx
                    shifted = pltpu.roll(x_cm, shift=(-delta) % m, axis=1)
                    taps.append(shifted * mk[t:t + 1, :])
        patches = jnp.concatenate(taps, axis=0)              # (9*C, M)
        return jnp.dot(w_mat, patches,
                       preferred_element_type=jnp.float32)   # (Cout, M)

    def bn_relu(y, g, b):
        # Exact batch statistics over (N, H, W) == the lane axis; centered
        # (two-pass style) variance on the resident f32 conv output.
        mean = jnp.mean(y, axis=1, keepdims=True)
        var = jnp.mean(jnp.square(y - mean), axis=1, keepdims=True)
        scale = g * jax.lax.rsqrt(var + eps)
        return jnp.maximum((y - mean) * scale + b, 0.0)

    hid = bn_relu(conv3x3(xc, w1_ref[...]), g1_ref[...], b1_ref[...])   # (Cmid, M)
    out = bn_relu(conv3x3(hid, w2_ref[...]), g2_ref[...], b2_ref[...])  # (Cout, M)
    o_ref[...] = out.astype(o_ref.dtype)


# ----------------------------------------------------------------------------
# Static (numpy) helpers: interpolation matrix and 3x3 tap validity masks
# ----------------------------------------------------------------------------
def _interp_pad_matrix_1d(n_in, n_out, pad_before):
    """(n_out, n_in): x2 bilinear upsample (align_corners=True) to 2*n_in,
    then zero-pad to n_out starting at row `pad_before` (F.pad semantics)."""
    n_up = 2 * n_in
    a = np.zeros((n_out, n_in), np.float32)
    for i in range(n_up):
        if n_in == 1:
            lo, f = 0, 0.0
        else:
            src = i * (n_in - 1) / (n_up - 1)
            lo = min(int(np.floor(src)), n_in - 2)
            f = src - lo
        r = i + pad_before
        if 0 <= r < n_out:
            a[r, lo] += 1.0 - f
            if n_in > 1:
                a[r, lo + 1] += f
    return a


def _upsample_pad_matrix(n, h1, w1, h2, w2):
    """(N*H1*W1, N*H2*W2) matrix realising upsample+pad on the channel-major
    flattened layout m = n*H*W + y*W + x (block-diagonal over batch)."""
    dy, dx = h2 - 2 * h1, w2 - 2 * w1
    ay = _interp_pad_matrix_1d(h1, h2, dy // 2)              # (H2, H1)
    ax = _interp_pad_matrix_1d(w1, w2, dx // 2)              # (W2, W1)
    blk = np.kron(ay, ax).T.astype(np.float32)               # (H1*W1, H2*W2)
    b = np.zeros((n * h1 * w1, n * h2 * w2), np.float32)
    for i in range(n):
        b[i * h1 * w1:(i + 1) * h1 * w1,
          i * h2 * w2:(i + 1) * h2 * w2] = blk
    return b


def _tap_masks(n, h, w):
    """(9, N*H*W) {0,1} masks: validity of each 3x3 tap (1-pixel zero halo)."""
    yy, xx = np.meshgrid(np.arange(h), np.arange(w), indexing="ij")
    m = np.zeros((9, n * h * w), np.float32)
    for dy in range(3):
        for dx in range(3):
            valid = ((yy + dy - 1 >= 0) & (yy + dy - 1 < h) &
                     (xx + dx - 1 >= 0) & (xx + dx - 1 < w))
            m[3 * dy + dx] = np.tile(valid.reshape(-1).astype(np.float32), n)
    return m


# ----------------------------------------------------------------------------
# Wrapper: layout plumbing (cheap XLA) + single pallas_call
# ----------------------------------------------------------------------------
def up_forward(x1_nchw, x2_nchw, p, eps=1e-5):
    """Pallas implementation of Up.forward. NCHW in / NCHW out like PyTorch."""
    n, c1, h1, w1 = x1_nchw.shape
    _, c2, h2, w2 = x2_nchw.shape
    cin = c1 + c2
    cmid = p["w1"].shape[-1]
    cout = p["w2"].shape[-1]
    m = n * h2 * w2

    # Channel-major, lane-dense flattened batch*spatial axis; im2col weights.
    x2_cm = jnp.transpose(x2_nchw, (1, 0, 2, 3)).reshape(c2, m)
    x1_cm = jnp.transpose(x1_nchw, (1, 0, 2, 3)).reshape(c1, n * h1 * w1)
    w1m = jnp.transpose(p["w1"].reshape(9 * cin, cmid))      # (Cmid, 9*Cin)
    w2m = jnp.transpose(p["w2"].reshape(9 * cmid, cout))     # (Cout, 9*Cmid)
    g1 = p["g1"].reshape(cmid, 1).astype(jnp.float32)
    b1 = p["b1"].reshape(cmid, 1).astype(jnp.float32)
    g2 = p["g2"].reshape(cout, 1).astype(jnp.float32)
    b2 = p["b2"].reshape(cout, 1).astype(jnp.float32)

    upmat = jnp.asarray(_upsample_pad_matrix(n, h1, w1, h2, w2))
    masks = jnp.asarray(_tap_masks(n, h2, w2))

    kernel = functools.partial(_up_fused_kernel, n=n, h=h2, w=w2, eps=eps)
    out_cm = pl.pallas_call(
        kernel,
        out_shape=jax.ShapeDtypeStruct((cout, m), jnp.float32),
        # No grid: the whole (tiny) problem is one resident VMEM block; all
        # inputs/outputs map whole-array to VMEM by default.
    )(x2_cm, x1_cm, upmat, masks, w1m, w2m, g1, b1, g2, b2)

    return jnp.transpose(out_cm.reshape(cout, n, h2, w2), (1, 0, 2, 3))


# ----------------------------------------------------------------------------
# Pure-JAX reference (gather-based upsample + lax conv + manual BN)
# ----------------------------------------------------------------------------
def _upsample_bilinear_2x_ref(x):
    """x: NHWC -> NHWC with 2x spatial size, align_corners=True semantics."""
    N, H, W, C = x.shape
    Ho, Wo = 2 * H, 2 * W

    def grid1d(n_in, n_out):
        if n_in == 1:
            lo = jnp.zeros((n_out,), jnp.int32)
            return lo, lo, jnp.zeros((n_out,), jnp.float32)
        src = jnp.arange(n_out, dtype=jnp.float32) * (n_in - 1) / (n_out - 1)
        lo = jnp.clip(jnp.floor(src).astype(jnp.int32), 0, n_in - 2)
        hi = lo + 1
        frac = src - lo.astype(jnp.float32)
        return lo, hi, frac

    y0, y1, fy = grid1d(H, Ho)
    x0, x1, fx = grid1d(W, Wo)
    r0, r1 = x[:, y0], x[:, y1]

    def interp_x(r):
        a, b = r[:, :, x0], r[:, :, x1]
        return a * (1.0 - fx)[None, None, :, None] + b * fx[None, None, :, None]

    top, bot = interp_x(r0), interp_x(r1)
    return top * (1.0 - fy)[None, :, None, None] + bot * fy[None, :, None, None]


def up_forward_ref(x1_nchw, x2_nchw, p, eps=1e-5):
    x1 = jnp.transpose(x1_nchw, (0, 2, 3, 1))
    x2 = jnp.transpose(x2_nchw, (0, 2, 3, 1))
    x1 = _upsample_bilinear_2x_ref(x1)
    diff_y = x2.shape[1] - x1.shape[1]
    diff_x = x2.shape[2] - x1.shape[2]
    x1 = jnp.pad(x1, ((0, 0),
                      (diff_y // 2, diff_y - diff_y // 2),
                      (diff_x // 2, diff_x - diff_x // 2),
                      (0, 0)))
    x = jnp.concatenate([x2, x1], axis=-1)

    def conv(z, w):
        return jax.lax.conv_general_dilated(
            z, w, window_strides=(1, 1), padding=((1, 1), (1, 1)),
            dimension_numbers=("NHWC", "HWIO", "NHWC"))

    def bn_relu(z, g, b):
        mu = z.mean((0, 1, 2))
        var = z.var((0, 1, 2))
        return jnp.maximum((z - mu) * (g / jnp.sqrt(var + eps)) + b, 0.0)

    y = bn_relu(conv(x, p["w1"]), p["g1"], p["b1"])
    y = bn_relu(conv(y, p["w2"]), p["g2"], p["b2"])
    return jnp.transpose(y, (0, 3, 1, 2))


# ----------------------------------------------------------------------------
# Main
# ----------------------------------------------------------------------------
if __name__ == "__main__":
    key = jax.random.PRNGKey(0)
    k1, k2, k3, k4, k5, k6, k7, k8 = jax.random.split(key, 8)

    in_ch, out_ch = 8, 4              # Up(in_channels=8, out_channels=4, bilinear=True)
    mid_ch = in_ch // 2

    # x1: decoder feature (smaller spatial), x2: skip feature; concat -> in_ch.
    x1 = jax.random.normal(k1, (2, in_ch // 2, 7, 7), jnp.float32)     # NCHW
    x2 = jax.random.normal(k2, (2, in_ch // 2, 16, 16), jnp.float32)   # NCHW

    params = {
        "w1": 0.1 * jax.random.normal(k3, (3, 3, in_ch, mid_ch), jnp.float32),   # HWIO
        "w2": 0.1 * jax.random.normal(k4, (3, 3, mid_ch, out_ch), jnp.float32),  # HWIO
        "g1": 1.0 + 0.1 * jax.random.normal(k5, (mid_ch,), jnp.float32),
        "b1": 0.1 * jax.random.normal(k6, (mid_ch,), jnp.float32),
        "g2": 1.0 + 0.1 * jax.random.normal(k7, (out_ch,), jnp.float32),
        "b2": 0.1 * jax.random.normal(k8, (out_ch,), jnp.float32),
    }

    out = jax.block_until_ready(jax.jit(up_forward)(x1, x2, params))
    assert out.shape == (2, out_ch, 16, 16), out.shape

    ref = jax.block_until_ready(up_forward_ref(x1, x2, params))
    # Tolerance covers MXU f32-matmul vs XLA conv/lerp rounding differences.
    np.testing.assert_allclose(np.asarray(out), np.asarray(ref),
                               rtol=1e-3, atol=1e-3)

    print("KERNEL_OK")
</pallas_src>

<mosaic_0001>
module attributes {stable_mosaic.version = 11 : i64} {
  func.func @_up_fused_kernel(%arg0: memref<4x512xf32, #tpu.memory_space<vmem>>, %arg1: memref<4x98xf32, #tpu.memory_space<vmem>>, %arg2: memref<98x512xf32, #tpu.memory_space<vmem>>, %arg3: memref<9x512xf32, #tpu.memory_space<vmem>>, %arg4: memref<4x72xf32, #tpu.memory_space<vmem>>, %arg5: memref<4x36xf32, #tpu.memory_space<vmem>>, %arg6: memref<4x1xf32, #tpu.memory_space<vmem>>, %arg7: memref<4x1xf32, #tpu.memory_space<vmem>>, %arg8: memref<4x1xf32, #tpu.memory_space<vmem>>, %arg9: memref<4x1xf32, #tpu.memory_space<vmem>>, %arg10: memref<4x512xf32, #tpu.memory_space<vmem>>) attributes {dimension_semantics = [], scalar_prefetch = 0 : i64, scratch_operands = 0 : i64, tpu.core_type = #tpu.core_type<tc>} {
    %c0 = arith.constant 0 : index
    %c0_0 = arith.constant 0 : index
    %0 = vector.load %arg3[%c0, %c0_0] : memref<9x512xf32, #tpu.memory_space<vmem>>, vector<9x512xf32>
    %c0_1 = arith.constant 0 : index
    %c0_2 = arith.constant 0 : index
    %1 = vector.load %arg1[%c0_1, %c0_2] : memref<4x98xf32, #tpu.memory_space<vmem>>, vector<4x98xf32>
    %c0_3 = arith.constant 0 : index
    %c0_4 = arith.constant 0 : index
    %2 = vector.load %arg2[%c0_3, %c0_4] : memref<98x512xf32, #tpu.memory_space<vmem>>, vector<98x512xf32>
    %cst = arith.constant dense<0.000000e+00> : vector<4x512xf32>
    %3 = tpu.matmul %1, %2, %cst {dimension_numbers = #tpu.dot_dimension_numbers<[1], [0], [0], [1], [0, 0, 1, 1], [], []>} : vector<4x98xf32>, vector<98x512xf32>, vector<4x512xf32> -> vector<4x512xf32>
    %c0_5 = arith.constant 0 : index
    %c0_6 = arith.constant 0 : index
    %4 = vector.load %arg0[%c0_5, %c0_6] : memref<4x512xf32, #tpu.memory_space<vmem>>, vector<4x512xf32>
    %5 = tpu.concatenate %4, %3 in 0 : vector<4x512xf32>, vector<4x512xf32> -> vector<8x512xf32>
    %c0_7 = arith.constant 0 : index
    %c0_8 = arith.constant 0 : index
    %6 = vector.load %arg4[%c0_7, %c0_8] : memref<4x72xf32, #tpu.memory_space<vmem>>, vector<4x72xf32>
    %c17_i32 = arith.constant 17 : i32
    %7 = tpu.dynamic_rotate %5 by %c17_i32 dim 1 : vector<8x512xf32>, i32 -> vector<8x512xf32>
    %8 = vector.extract_strided_slice %0 {offsets = [0, 0], sizes = [1, 512], strides = [1, 1]} : vector<9x512xf32> to vector<1x512xf32>
    %9 = vector.broadcast %8 : vector<1x512xf32> to vector<8x512xf32>
    %10 = arith.mulf %7, %9 : vector<8x512xf32>
    %c16_i32 = arith.constant 16 : i32
    %11 = tpu.dynamic_rotate %5 by %c16_i32 dim 1 : vector<8x512xf32>, i32 -> vector<8x512xf32>
    %12 = vector.extract_strided_slice %0 {offsets = [1, 0], sizes = [1, 512], strides = [1, 1]} : vector<9x512xf32> to vector<1x512xf32>
    %13 = vector.broadcast %12 : vector<1x512xf32> to vector<8x512xf32>
    %14 = arith.mulf %11, %13 : vector<8x512xf32>
    %c15_i32 = arith.constant 15 : i32
    %15 = tpu.dynamic_rotate %5 by %c15_i32 dim 1 : vector<8x512xf32>, i32 -> vector<8x512xf32>
    %16 = vector.extract_strided_slice %0 {offsets = [2, 0], sizes = [1, 512], strides = [1, 1]} : vector<9x512xf32> to vector<1x512xf32>
    %17 = vector.broadcast %16 : vector<1x512xf32> to vector<8x512xf32>
    %18 = arith.mulf %15, %17 : vector<8x512xf32>
    %c1_i32 = arith.constant 1 : i32
    %19 = tpu.dynamic_rotate %5 by %c1_i32 dim 1 : vector<8x512xf32>, i32 -> vector<8x512xf32>
    %20 = vector.extract_strided_slice %0 {offsets = [3, 0], sizes = [1, 512], strides = [1, 1]} : vector<9x512xf32> to vector<1x512xf32>
    %21 = vector.broadcast %20 : vector<1x512xf32> to vector<8x512xf32>
    %22 = arith.mulf %19, %21 : vector<8x512xf32>
    %c511_i32 = arith.constant 511 : i32
    %23 = tpu.dynamic_rotate %5 by %c511_i32 dim 1 : vector<8x512xf32>, i32 -> vector<8x512xf32>
    %24 = vector.extract_strided_slice %0 {offsets = [5, 0], sizes = [1, 512], strides = [1, 1]} : vector<9x512xf32> to vector<1x512xf32>
    %25 = vector.broadcast %24 : vector<1x512xf32> to vector<8x512xf32>
    %26 = arith.mulf %23, %25 : vector<8x512xf32>
    %c497_i32 = arith.constant 497 : i32
    %27 = tpu.dynamic_rotate %5 by %c497_i32 dim 1 : vector<8x512xf32>, i32 -> vector<8x512xf32>
    %28 = vector.extract_strided_slice %0 {offsets = [6, 0], sizes = [1, 512], strides = [1, 1]} : vector<9x512xf32> to vector<1x512xf32>
    %29 = vector.broadcast %28 : vector<1x512xf32> to vector<8x512xf32>
    %30 = arith.mulf %27, %29 : vector<8x512xf32>
    %c496_i32 = arith.constant 496 : i32
    %31 = tpu.dynamic_rotate %5 by %c496_i32 dim 1 : vector<8x512xf32>, i32 -> vector<8x512xf32>
    %32 = vector.extract_strided_slice %0 {offsets = [7, 0], sizes = [1, 512], strides = [1, 1]} : vector<9x512xf32> to vector<1x512xf32>
    %33 = vector.broadcast %32 : vector<1x512xf32> to vector<8x512xf32>
    %34 = arith.mulf %31, %33 : vector<8x512xf32>
    %c495_i32 = arith.constant 495 : i32
    %35 = tpu.dynamic_rotate %5 by %c495_i32 dim 1 : vector<8x512xf32>, i32 -> vector<8x512xf32>
    %36 = vector.extract_strided_slice %0 {offsets = [8, 0], sizes = [1, 512], strides = [1, 1]} : vector<9x512xf32> to vector<1x512xf32>
    %37 = vector.broadcast %36 : vector<1x512xf32> to vector<8x512xf32>
    %38 = arith.mulf %35, %37 : vector<8x512xf32>
    %39 = tpu.concatenate %10, %14, %18, %22, %5, %26, %30, %34, %38 in 0 : vector<8x512xf32>, vector<8x512xf32>, vector<8x512xf32>, vector<8x512xf32>, vector<8x512xf32>, vector<8x512xf32>, vector<8x512xf32>, vector<8x512xf32>, vector<8x512xf32> -> vector<72x512xf32>
    %cst_9 = arith.constant dense<0.000000e+00> : vector<4x512xf32>
    %40 = tpu.matmul %6, %39, %cst_9 {dimension_numbers = #tpu.dot_dimension_numbers<[1], [0], [0], [1], [0, 0, 1, 1], [], []>} : vector<4x72xf32>, vector<72x512xf32>, vector<4x512xf32> -> vector<4x512xf32>
    %c0_10 = arith.constant 0 : index
    %c0_11 = arith.constant 0 : index
    %41 = vector.load %arg6[%c0_10, %c0_11] : memref<4x1xf32, #tpu.memory_space<vmem>>, vector<4x1xf32>
    %c0_12 = arith.constant 0 : index
    %c0_13 = arith.constant 0 : index
    %42 = vector.load %arg7[%c0_12, %c0_13] : memref<4x1xf32, #tpu.memory_space<vmem>>, vector<4x1xf32>
    %cst_14 = arith.constant dense<0.000000e+00> : vector<4xf32>
    %43 = vector.multi_reduction <add>, %40, %cst_14 [1] : vector<4x512xf32> to vector<4xf32>
    %44 = vector.shape_cast %43 : vector<4xf32> to vector<4x1xf32>
    %cst_15 = arith.constant 5.120000e+02 : f32
    %45 = vector.broadcast %cst_15 : f32 to vector<4x1xf32>
    %46 = arith.divf %44, %45 : vector<4x1xf32>
    %47 = vector.broadcast %46 : vector<4x1xf32> to vector<4x512xf32>
    %48 = arith.subf %40, %47 : vector<4x512xf32>
    %49 = arith.mulf %48, %48 : vector<4x512xf32>
    %cst_16 = arith.constant dense<0.000000e+00> : vector<4xf32>
    %50 = vector.multi_reduction <add>, %49, %cst_16 [1] : vector<4x512xf32> to vector<4xf32>
    %51 = vector.shape_cast %50 : vector<4xf32> to vector<4x1xf32>
    %cst_17 = arith.constant 5.120000e+02 : f32
    %52 = vector.broadcast %cst_17 : f32 to vector<4x1xf32>
    %53 = arith.divf %51, %52 : vector<4x1xf32>
    %cst_18 = arith.constant 9.99999974E-6 : f32
    %54 = vector.broadcast %cst_18 : f32 to vector<4x1xf32>
    %55 = arith.addf %53, %54 : vector<4x1xf32>
    %56 = math.rsqrt %55 : vector<4x1xf32>
    %57 = arith.mulf %41, %56 : vector<4x1xf32>
    %58 = vector.broadcast %46 : vector<4x1xf32> to vector<4x512xf32>
    %59 = arith.subf %40, %58 : vector<4x512xf32>
    %60 = vector.broadcast %57 : vector<4x1xf32> to vector<4x512xf32>
    %61 = arith.mulf %59, %60 : vector<4x512xf32>
    %62 = vector.broadcast %42 : vector<4x1xf32> to vector<4x512xf32>
    %63 = arith.addf %61, %62 : vector<4x512xf32>
    %cst_19 = arith.constant 0.000000e+00 : f32
    %64 = vector.broadcast %cst_19 : f32 to vector<4x512xf32>
    %65 = arith.maximumf %63, %64 : vector<4x512xf32>
    %c0_20 = arith.constant 0 : index
    %c0_21 = arith.constant 0 : index
    %66 = vector.load %arg5[%c0_20, %c0_21] : memref<4x36xf32, #tpu.memory_space<vmem>>, vector<4x36xf32>
    %c17_i32_22 = arith.constant 17 : i32
    %67 = tpu.dynamic_rotate %65 by %c17_i32_22 dim 1 : vector<4x512xf32>, i32 -> vector<4x512xf32>
    %68 = vector.extract_strided_slice %0 {offsets = [0, 0], sizes = [1, 512], strides = [1, 1]} : vector<9x512xf32> to vector<1x512xf32>
    %69 = vector.broadcast %68 : vector<1x512xf32> to vector<4x512xf32>
    %70 = arith.mulf %67, %69 : vector<4x512xf32>
    %c16_i32_23 = arith.constant 16 : i32
    %71 = tpu.dynamic_rotate %65 by %c16_i32_23 dim 1 : vector<4x512xf32>, i32 -> vector<4x512xf32>
    %72 = vector.extract_strided_slice %0 {offsets = [1, 0], sizes = [1, 512], strides = [1, 1]} : vector<9x512xf32> to vector<1x512xf32>
    %73 = vector.broadcast %72 : vector<1x512xf32> to vector<4x512xf32>
    %74 = arith.mulf %71, %73 : vector<4x512xf32>
    %c15_i32_24 = arith.constant 15 : i32
    %75 = tpu.dynamic_rotate %65 by %c15_i32_24 dim 1 : vector<4x512xf32>, i32 -> vector<4x512xf32>
    %76 = vector.extract_strided_slice %0 {offsets = [2, 0], sizes = [1, 512], strides = [1, 1]} : vector<9x512xf32> to vector<1x512xf32>
    %77 = vector.broadcast %76 : vector<1x512xf32> to vector<4x512xf32>
    %78 = arith.mulf %75, %77 : vector<4x512xf32>
    %c1_i32_25 = arith.constant 1 : i32
    %79 = tpu.dynamic_rotate %65 by %c1_i32_25 dim 1 : vector<4x512xf32>, i32 -> vector<4x512xf32>
    %80 = vector.extract_strided_slice %0 {offsets = [3, 0], sizes = [1, 512], strides = [1, 1]} : vector<9x512xf32> to vector<1x512xf32>
    %81 = vector.broadcast %80 : vector<1x512xf32> to vector<4x512xf32>
    %82 = arith.mulf %79, %81 : vector<4x512xf32>
    %c511_i32_26 = arith.constant 511 : i32
    %83 = tpu.dynamic_rotate %65 by %c511_i32_26 dim 1 : vector<4x512xf32>, i32 -> vector<4x512xf32>
    %84 = vector.extract_strided_slice %0 {offsets = [5, 0], sizes = [1, 512], strides = [1, 1]} : vector<9x512xf32> to vector<1x512xf32>
    %85 = vector.broadcast %84 : vector<1x512xf32> to vector<4x512xf32>
    %86 = arith.mulf %83, %85 : vector<4x512xf32>
    %c497_i32_27 = arith.constant 497 : i32
    %87 = tpu.dynamic_rotate %65 by %c497_i32_27 dim 1 : vector<4x512xf32>, i32 -> vector<4x512xf32>
    %88 = vector.extract_strided_slice %0 {offsets = [6, 0], sizes = [1, 512], strides = [1, 1]} : vector<9x512xf32> to vector<1x512xf32>
    %89 = vector.broadcast %88 : vector<1x512xf32> to vector<4x512xf32>
    %90 = arith.mulf %87, %89 : vector<4x512xf32>
    %c496_i32_28 = arith.constant 496 : i32
    %91 = tpu.dynamic_rotate %65 by %c496_i32_28 dim 1 : vector<4x512xf32>, i32 -> vector<4x512xf32>
    %92 = vector.extract_strided_slice %0 {offsets = [7, 0], sizes = [1, 512], strides = [1, 1]} : vector<9x512xf32> to vector<1x512xf32>
    %93 = vector.broadcast %92 : vector<1x512xf32> to vector<4x512xf32>
    %94 = arith.mulf %91, %93 : vector<4x512xf32>
    %c495_i32_29 = arith.constant 495 : i32
    %95 = tpu.dynamic_rotate %65 by %c495_i32_29 dim 1 : vector<4x512xf32>, i32 -> vector<4x512xf32>
    %96 = vector.extract_strided_slice %0 {offsets = [8, 0], sizes = [1, 512], strides = [1, 1]} : vector<9x512xf32> to vector<1x512xf32>
    %97 = vector.broadcast %96 : vector<1x512xf32> to vector<4x512xf32>
    %98 = arith.mulf %95, %97 : vector<4x512xf32>
    %99 = tpu.concatenate %70, %74, %78, %82, %65, %86, %90, %94, %98 in 0 : vector<4x512xf32>, vector<4x512xf32>, vector<4x512xf32>, vector<4x512xf32>, vector<4x512xf32>, vector<4x512xf32>, vector<4x512xf32>, vector<4x512xf32>, vector<4x512xf32> -> vector<36x512xf32>
    %cst_30 = arith.constant dense<0.000000e+00> : vector<4x512xf32>
    %100 = tpu.matmul %66, %99, %cst_30 {dimension_numbers = #tpu.dot_dimension_numbers<[1], [0], [0], [1], [0, 0, 1, 1], [], []>} : vector<4x36xf32>, vector<36x512xf32>, vector<4x512xf32> -> vector<4x512xf32>
    %c0_31 = arith.constant 0 : index
    %c0_32 = arith.constant 0 : index
    %101 = vector.load %arg8[%c0_31, %c0_32] : memref<4x1xf32, #tpu.memory_space<vmem>>, vector<4x1xf32>
    %c0_33 = arith.constant 0 : index
    %c0_34 = arith.constant 0 : index
    %102 = vector.load %arg9[%c0_33, %c0_34] : memref<4x1xf32, #tpu.memory_space<vmem>>, vector<4x1xf32>
    %cst_35 = arith.constant dense<0.000000e+00> : vector<4xf32>
    %103 = vector.multi_reduction <add>, %100, %cst_35 [1] : vector<4x512xf32> to vector<4xf32>
    %104 = vector.shape_cast %103 : vector<4xf32> to vector<4x1xf32>
    %cst_36 = arith.constant 5.120000e+02 : f32
    %105 = vector.broadcast %cst_36 : f32 to vector<4x1xf32>
    %106 = arith.divf %104, %105 : vector<4x1xf32>
    %107 = vector.broadcast %106 : vector<4x1xf32> to vector<4x512xf32>
    %108 = arith.subf %100, %107 : vector<4x512xf32>
    %109 = arith.mulf %108, %108 : vector<4x512xf32>
    %cst_37 = arith.constant dense<0.000000e+00> : vector<4xf32>
    %110 = vector.multi_reduction <add>, %109, %cst_37 [1] : vector<4x512xf32> to vector<4xf32>
    %111 = vector.shape_cast %110 : vector<4xf32> to vector<4x1xf32>
    %cst_38 = arith.constant 5.120000e+02 : f32
    %112 = vector.broadcast %cst_38 : f32 to vector<4x1xf32>
    %113 = arith.divf %111, %112 : vector<4x1xf32>
    %cst_39 = arith.constant 9.99999974E-6 : f32
    %114 = vector.broadcast %cst_39 : f32 to vector<4x1xf32>
    %115 = arith.addf %113, %114 : vector<4x1xf32>
    %116 = math.rsqrt %115 : vector<4x1xf32>
    %117 = arith.mulf %101, %116 : vector<4x1xf32>
    %118 = vector.broadcast %106 : vector<4x1xf32> to vector<4x512xf32>
    %119 = arith.subf %100, %118 : vector<4x512xf32>
    %120 = vector.broadcast %117 : vector<4x1xf32> to vector<4x512xf32>
    %121 = arith.mulf %119, %120 : vector<4x512xf32>
    %122 = vector.broadcast %102 : vector<4x1xf32> to vector<4x512xf32>
    %123 = arith.addf %121, %122 : vector<4x512xf32>
    %cst_40 = arith.constant 0.000000e+00 : f32
    %124 = vector.broadcast %cst_40 : f32 to vector<4x512xf32>
    %125 = arith.maximumf %123, %124 : vector<4x512xf32>
    %c0_41 = arith.constant 0 : index
    %c0_42 = arith.constant 0 : index
    %126 = vector.load %arg10[%c0_41, %c0_42] : memref<4x512xf32, #tpu.memory_space<vmem>>, vector<4x512xf32>
    tpu.vector_store %arg10[%c0_41, %c0_42], %125 {strides = array<i32>} : memref<4x512xf32, #tpu.memory_space<vmem>>, vector<4x512xf32>,
    return
  }
}

</mosaic_0001>

<bundles_post_ra>
// kernel: up_forward.1
= control target key start
LH: loop header
LB: loop body
LE: loop exit
PB: predicated region body
PF: predicated region fallthrough
CT: control target
= control target key end

     0   :  { %vm100_vm0 = vcmask 1041408   ;;  %v1205_v3 = vmov 0.0   ;;  %vm96_vm1 = vcmask 801792   ;;  %vm275_vm2 = vcmask 1043456   ;;  %s1206_s21 = smov 111   ;;  %s1207_s22 = smov 112   ;;  %s2076_s2 = inlined_call_operand.vmem [shape: f32[98,512], index: 2, kind: input, shape index: {}]   ;;  %s2077_s1 = inlined_call_operand.vmem [shape: f32[4,98], index: 1, kind: input, shape index: {}]   ;;  %s2078_s0 = inlined_call_operand.vmem [shape: f32[4,512], index: 0, kind: input, shape index: {}]   ;;  %s2079_s3 = inlined_call_operand.vmem [shape: f32[9,512], index: 3, kind: input, shape index: {}]   ;;  %s2080_s4 = inlined_call_operand.vmem [shape: f32[4,72], index: 4, kind: input, shape index: {}]   ;;  %s2081_s7 = inlined_call_operand.vmem [shape: f32[4,1], index: 7, kind: input, shape index: {}]   ;;  %s2082_s6 = inlined_call_operand.vmem [shape: f32[4,1], index: 6, kind: input, shape index: {}]   ;;  %s2083_s5 = inlined_call_operand.vmem [shape: f32[4,36], index: 5, kind: input, shape index: {}]   ;;  %s2084_s9 = inlined_call_operand.vmem [shape: f32[4,1], index: 9, kind: input, shape index: {}]   ;;  %s2085_s8 = inlined_call_operand.vmem [shape: f32[4,1], index: 8, kind: input, shape index: {}]   ;;  %s2086_s10 = inlined_call_operand.vmem [shape: f32[4,512], index: 10, kind: output, shape index: {}]  }
   0x1   :  { %v93_v0 = vld [vmem:[%s2076_s2 + $0x188] sm:$0x3]  ;;  %v95_v1 = vld [vmem:[%s2076_s2 + $0x198] sm:$0x3]  ;;  %v92_v2 = vld [vmem:[%s2076_s2 + $0x180] sm:$0x3]  ;;  %177 = vmatprep.mubr.f32.mxu0 %v1205_v3  ;;  %248 = vmatprep.mubr.f32.mxu1 %v1205_v3 }
   0x2   :  { %1169 = vmatprep.subr.msk.mxu0 %vm100_vm0, %v93_v0  ;;  %1172 = vmatprep.subr.msk.mxu1 %vm100_vm0, %v95_v1  ;;  %v94_v4 = vld [vmem:[%s2076_s2 + $0x190] sm:$0x3]  ;;  %v89_v5 = vld [vmem:[%s2076_s2 + $0x168] sm:$0xff]  ;;  %v91_v6 = vld [vmem:[%s2076_s2 + $0x178] sm:$0xff]  ;;  %s1209_s23 = smov 113   ;;  %s1210_s24 = smov 1  }
   0x3   :  { %1170 = vmatpush1.msk.msra.mxu0 %vm100_vm0, %v92_v2  ;;  %1173 = vmatpush1.msk.msra.mxu1 %vm100_vm0, %v94_v4  ;;  %v88_v7 = vld [vmem:[%s2076_s2 + $0x160] sm:$0xff]  ;;  %v90_v8 = vld [vmem:[%s2076_s2 + $0x170] sm:$0xff]  ;;  %v85_v9 = vld [vmem:[%s2076_s2 + $0x148] sm:$0xff]  ;;  %s1211_s25 = smov 17   ;;  %s1212_s26 = smov 127   ;;  %vm547_vm11 = vcmask 588800  }
   0x4   :  { %121 = vmatprep.subr.mxu0 %v89_v5  ;;  %192 = vmatprep.subr.mxu1 %v91_v6  ;;  %v87_v10 = vld [vmem:[%s2076_s2 + $0x158] sm:$0xff]  ;;  %v84_v11 = vld [vmem:[%s2076_s2 + $0x140] sm:$0xff]  ;;  %v86_v12 = vld [vmem:[%s2076_s2 + $0x150] sm:$0xff]  ;;  %s1213_s27 = smov 15   ;;  %vm942_vm12 = vcmask 293888  }
   0x5   :  { %122 = vmatpush1.msra.mxu0 %v88_v7  ;;  %193 = vmatpush1.msra.mxu1 %v90_v8  ;;  %v81_v13 = vld [vmem:[%s2076_s2 + $0x128] sm:$0xff]  ;;  %v83_v14 = vld [vmem:[%s2076_s2 + $0x138] sm:$0xff]  ;;  %v80_v15 = vld [vmem:[%s2076_s2 + $0x120] sm:$0xff] }
   0x6   :  { %123 = vmatprep.subr.mxu0 %v85_v9  ;;  %194 = vmatprep.subr.mxu1 %v87_v10  ;;  %v82_v16 = vld [vmem:[%s2076_s2 + $0x130] sm:$0xff]  ;;  %v77_v17 = vld [vmem:[%s2076_s2 + $0x108] sm:$0xff]  ;;  %v79_v18 = vld [vmem:[%s2076_s2 + $0x118] sm:$0xff] }
   0x7   :  { %124 = vmatpush1.msra.mxu0 %v84_v11  ;;  %195 = vmatpush1.msra.mxu1 %v86_v12  ;;  %v76_v19 = vld [vmem:[%s2076_s2 + $0x100] sm:$0xff]  ;;  %v78_v20 = vld [vmem:[%s2076_s2 + $0x110] sm:$0xff]  ;;  %v73_v21 = vld [vmem:[%s2076_s2 + $0xe8] sm:$0xff] }
   0x8   :  { %125 = vmatprep.subr.mxu0 %v81_v13  ;;  %196 = vmatprep.subr.mxu1 %v83_v14  ;;  %v75_v22 = vld [vmem:[%s2076_s2 + $0xf8] sm:$0xff]  ;;  %v72_v23 = vld [vmem:[%s2076_s2 + $0xe0] sm:$0xff]  ;;  %v74_v24 = vld [vmem:[%s2076_s2 + $0xf0] sm:$0xff]  ;;  %v289_v13 = vlaneseq }
   0x9   :  { %126 = vmatpush1.msra.mxu0 %v80_v15  ;;  %197 = vmatpush1.msra.mxu1 %v82_v16  ;;  %v69_v25 = vld [vmem:[%s2076_s2 + $0xc8] sm:$0xff]  ;;  %v71_v26 = vld [vmem:[%s2076_s2 + $0xd8] sm:$0xff]  ;;  %v68_v27 = vld [vmem:[%s2076_s2 + $0xc0] sm:$0xff] }
   0xa   :  { %127 = vmatprep.subr.mxu0 %v77_v17  ;;  %198 = vmatprep.subr.mxu1 %v79_v18  ;;  %v70_v28 = vld [vmem:[%s2076_s2 + $0xd0] sm:$0xff]  ;;  %v65_v29 = vld [vmem:[%s2076_s2 + $0xa8] sm:$0xff]  ;;  %v67_v30 = vld [vmem:[%s2076_s2 + $0xb8] sm:$0xff]  ;;  %v1527_v16 = vand.u32 127, %v289_v13 }
   0xb   :  { %128 = vmatpush1.msra.mxu0 %v76_v19  ;;  %199 = vmatpush1.msra.mxu1 %v78_v20  ;;  %v64_v31 = vld [vmem:[%s2076_s2 + $0xa0] sm:$0xff]  ;;  %v66_v32 = vld [vmem:[%s2076_s2 + $0xb0] sm:$0xff]  ;;  %v61_v33 = vld [vmem:[%s2076_s2 + $0x88] sm:$0xff] }
   0xc   :  { %129 = vmatprep.subr.mxu0 %v73_v21  ;;  %200 = vmatprep.subr.mxu1 %v75_v22  ;;  %v63_v34 = vld [vmem:[%s2076_s2 + $0x98] sm:$0xff]  ;;  %v60_v35 = vld [vmem:[%s2076_s2 + $0x80] sm:$0xff]  ;;  %v62_v36 = vld [vmem:[%s2076_s2 + $0x90] sm:$0xff]  ;;  %vm522_vm3 = vcmp.lt.s32.totalorder %v1527_v16, 111  ;;  %vm456_vm4 = vcmp.lt.s32.totalorder %v1527_v16, 113  ;;  %vm489_vm5 = vcmp.lt.s32.totalorder %v1527_v16, 112 }
   0xd   :  { %130 = vmatpush1.msra.mxu0 %v72_v23  ;;  %201 = vmatpush1.msra.mxu1 %v74_v24  ;;  %v57_v37 = vld [vmem:[%s2076_s2 + $0x68] sm:$0xff]  ;;  %v59_v38 = vld [vmem:[%s2076_s2 + $0x78] sm:$0xff]  ;;  %v56_v39 = vld [vmem:[%s2076_s2 + $0x60] sm:$0xff]  ;;  %vm423_vm6 = vcmp.lt.s32.totalorder %v1527_v16, 127  ;;  %vm390_vm7 = vcmp.lt.s32.totalorder %v1527_v16, 1  ;;  %vm357_vm8 = vcmp.lt.s32.totalorder %v1527_v16, 15 }
   0xe   :  { %131 = vmatprep.subr.mxu0 %v69_v25  ;;  %202 = vmatprep.subr.mxu1 %v71_v26  ;;  %v58_v40 = vld [vmem:[%s2076_s2 + $0x70] sm:$0xff]  ;;  %v53_v41 = vld [vmem:[%s2076_s2 + $0x48] sm:$0xff]  ;;  %v55_v42 = vld [vmem:[%s2076_s2 + $0x58] sm:$0xff]  ;;  %vm324_vm9 = vcmp.lt.s32.totalorder %v1527_v16, 16  ;;  %vm291_vm10 = vcmp.lt.s32.totalorder %v1527_v16, 17 }
   0xf   :  { %132 = vmatpush1.msra.mxu0 %v68_v27  ;;  %203 = vmatpush1.msra.mxu1 %v70_v28  ;;  %v52_v43 = vld [vmem:[%s2076_s2 + $0x40] sm:$0xff]  ;;  %v54_v44 = vld [vmem:[%s2076_s2 + $0x50] sm:$0xff]  ;;  %v49_v45 = vld [vmem:[%s2076_s2 + $0x28] sm:$0xff]  ;;  %v1554_v28 = vshrl.u32 %v289_v13, 7 }
  0x10   :  { %133 = vmatprep.subr.mxu0 %v65_v29  ;;  %204 = vmatprep.subr.mxu1 %v67_v30  ;;  %v51_v46 = vld [vmem:[%s2076_s2 + $0x38] sm:$0xff]  ;;  %v48_v47 = vld [vmem:[%s2076_s2 + $0x20] sm:$0xff]  ;;  %v50_v48 = vld [vmem:[%s2076_s2 + $0x30] sm:$0xff] }
  0x11   :  { %134 = vmatpush1.msra.mxu0 %v64_v31  ;;  %205 = vmatpush1.msra.mxu1 %v66_v32  ;;  %v45_v49 = vld [vmem:[%s2076_s2 + $0x8] sm:$0xff]  ;;  %v47_v50 = vld [vmem:[%s2076_s2 + $0x18] sm:$0xff]  ;;  %v44_v51 = vld [vmem:[%s2076_s2] sm:$0xff]  ;;  %v496_v30 = vsub.s32 7, %v1554_v28 }
  0x12   :  { %135 = vmatprep.subr.mxu0 %v61_v33  ;;  %206 = vmatprep.subr.mxu1 %v63_v34  ;;  %v46_v52 = vld [vmem:[%s2076_s2 + $0x10] sm:$0xff]  ;;  %v43_v53 = vld [vmem:[%s2077_s1] sm:$0xf]  ;;  %v256_v57 = vld [vmem:[%s2078_s0 + $0x8] sm:$0xff]  ;;  %v463_v33 = vsub.s32 6, %v1554_v28 }
  0x13   :  { %136 = vmatpush1.msra.mxu0 %v60_v35  ;;  %207 = vmatpush1.msra.mxu1 %v62_v36  ;;  %v255_v55 = vld [vmem:[%s2078_s0] sm:$0xff]  ;;  %s1208_s0 = smov 16   ;;  %v260_v4 = vcombine.high %v256_v57, %v256_v57  ;;  %v1542_v20 = vld [vmem:[%s2079_s3 + $0x28] ss:$0 sm:$0xff]  ;;  %v1560_v31 = vld [vmem:[%s2079_s3 + $0x30] ss:$0 sm:$0xff] }
  0x14   :  { %137 = vmatprep.subr.mxu0 %v57_v37  ;;  %208 = vmatprep.subr.mxu1 %v59_v38  ;;  %v259_v63 = vcombine.high %v255_v55, %v255_v55  ;;  %v1537_v19 = vld [vmem:[%s2079_s3 + $0x20] ss:$0 sm:$0xff]  ;;  %v1565_v32 = vld [vmem:[%s2079_s3 + $0x38] ss:$0 sm:$0xff]  ;;  %v430_v36 = vsub.s32 5, %v1554_v28  ;;  %v1579_v38 = vld [vmem:[%s2079_s3 + $0x8] sm:$0xff] }
  0x15   :  { %138 = vmatpush1.msra.mxu0 %v56_v39  ;;  %209 = vmatpush1.msra.mxu1 %v58_v40  ;;  %v1574_v37 = vld [vmem:[%s2079_s3] sm:$0xff] }
  0x16   :  { %139 = vmatprep.subr.mxu0 %v53_v41  ;;  %210 = vmatprep.subr.mxu1 %v55_v42 }
  0x17   :  { %140 = vmatpush1.msra.mxu0 %v52_v43  ;;  %211 = vmatpush1.msra.mxu1 %v54_v44  ;;  %v1590_v43 = vrot.slane %v1574_v37, %v496_v30  ;;  %v1593_v44 = vrot.slane %v1579_v38, %v496_v30 }
  0x18   :  { %141 = vmatprep.subr.mxu0 %v49_v45  ;;  %212 = vmatprep.subr.mxu1 %v51_v46  ;;  %v1598_v45 = vld [vmem:[%s2079_s3 + $0x10] sm:$0xff]  ;;  %v1603_v46 = vld [vmem:[%s2079_s3 + $0x18] sm:$0xff] }
  0x19   :  { %142 = vmatpush1.msra.mxu0 %v48_v47  ;;  %213 = vmatpush1.msra.mxu1 %v50_v48  ;;  %v1606_v47 = vrot.slane %v1574_v37, %v463_v33  ;;  %v1609_v48 = vrot.slane %v1579_v38, %v463_v33 }
  0x1a   :  { %143 = vmatprep.subr.mxu0 %v45_v49  ;;  %214 = vmatprep.subr.mxu1 %v47_v50  ;;  %v1613_v50 = vrot.slane %v1579_v38, %v430_v36 }
  0x1b   :  { %144 = vmatpush1.msra.mxu0 %v44_v51  ;;  %215 = vmatpush1.msra.mxu1 %v46_v52 }
  0x1c   :  { %1171 = vmatmul.mubr.msk.f32.vlgmr.msra.gmra.mxu0 %vm96_vm1, %v43_v53  ;;  %1174 = vmatmul.mubr.msk.f32.vlgmr.msra.gmra.mxu1 %vm96_vm1, %v43_v53 }
  0x1d   :  { %615 = vmatprep.mubr.f32.mxu0 %v1205_v3  ;;  %686 = vmatprep.mubr.f32.mxu1 %v1205_v3 }
  0xdc   :  { %v179_v54 = vpop.f32.mrf.mxu0  ;;  %v250_v56 = vpop.f32.mrf.mxu1 }
  0xdd   :  { %v267_v58 = vrot.slane %v179_v54, 4  ;;  %v269_v59 = vrot.slane %v250_v56, 4 }
  0xde   :  { %v181_v62 = vpop.f32.mrf.mxu0  ;;  %v252_v2 = vpop.f32.mrf.mxu1 }
  0xdf   :  { %v1440_v60 = vsel %vm275_vm2, %v255_v55, %v267_v58  ;;  %v1443_v61 = vsel %vm275_vm2, %v256_v57, %v269_v59  ;;  %v268_v0 = vrot.slane %v181_v62, 4  ;;  %v270_v5 = vrot.slane %v252_v2, 4 }
  0xe0   :  { %518 = vrot.lane.b32.xlu0 %v1443_v61, %s1206_s21  ;;  %514 = vrot.lane.b32.xlu1 %v1440_v60, %s1206_s21  ;;  %v1625_v55 = vrot.slane %v1598_v45, %v496_v30  ;;  %v1633_v59 = vrot.slane %v1603_v46, %v496_v30  ;;  %v1636_v62 = vrot.slane %v1574_v37, %v430_v36 }
  0xe1   :  { %v1466_v1 = vsel %vm275_vm2, %v259_v63, %v268_v0  ;;  %v1477_v6 = vsel %vm275_vm2, %v260_v4, %v270_v5 }
  0xe4   :  { %485 = vrot.lane.b32.xlu0 %v1443_v61, %s1207_s22  ;;  %481 = vrot.lane.b32.xlu1 %v1440_v60, %s1207_s22 }
  0xe8   :  { %316 = vrot.lane.b32.xlu0 %v1440_v60, %s1208_s0  ;;  %452 = vrot.lane.b32.xlu1 %v1443_v61, %s1209_s23 }
  0xec   :  { %386 = vrot.lane.b32.xlu0 %v1443_v61, %s1210_s24  ;;  %448 = vrot.lane.b32.xlu1 %v1440_v60, %s1209_s23 }
  0xf0   :  { %281 = vrot.lane.b32.xlu0 %v1440_v60, %s1211_s25  ;;  %419 = vrot.lane.b32.xlu1 %v1443_v61, %s1212_s26 }
  0xf4   :  { %415 = vrot.lane.b32.xlu1 %v1440_v60, %s1212_s26  ;;  %516 = vrot.lane.b32.xlu0 %v1466_v1, %s1206_s21 }
  0xf8   :  { %382 = vrot.lane.b32.xlu1 %v1440_v60, %s1210_s24  ;;  %450 = vrot.lane.b32.xlu0 %v1466_v1, %s1209_s23 }
  0xfc   :  { %349 = vrot.lane.b32.xlu1 %v1440_v60, %s1213_s27  ;;  %520 = vrot.lane.b32.xlu0 %v1477_v6, %s1206_s21 }
 0x100   :  { %483 = vrot.lane.b32.xlu1 %v1466_v1, %s1207_s22  ;;  %417 = vrot.lane.b32.xlu0 %v1466_v1, %s1212_s26 }
 0x104   :  { %421 = vrot.lane.b32.xlu1 %v1477_v6, %s1212_s26  ;;  %487 = vrot.lane.b32.xlu0 %v1477_v6, %s1207_s22 }
 0x108   :  { %355 = vrot.lane.b32.xlu1 %v1477_v6, %s1213_s27  ;;  %454 = vrot.lane.b32.xlu0 %v1477_v6, %s1209_s23 }
 0x10c   :  { %318 = vrot.lane.b32.xlu1 %v1466_v1, %s1208_s0  ;;  %384 = vrot.lane.b32.xlu0 %v1466_v1, %s1210_s24 }
 0x110   :  { %322 = vrot.lane.b32.xlu1 %v1477_v6, %s1208_s0  ;;  %388 = vrot.lane.b32.xlu0 %v1477_v6, %s1210_s24 }
 0x114   :  { %283 = vrot.lane.b32.xlu1 %v1466_v1, %s1211_s25  ;;  %351 = vrot.lane.b32.xlu0 %v1466_v1, %s1213_s27 }
 0x118   :  { %287 = vrot.lane.b32.xlu1 %v1477_v6, %s1211_s25  ;;  %353 = vrot.lane.b32.xlu0 %v1443_v61, %s1213_s27 }
 0x11c   :  { %285 = vrot.lane.b32.xlu1 %v1443_v61, %s1211_s25  ;;  %320 = vrot.lane.b32.xlu0 %v1443_v61, %s1208_s0 }
 0x152   :  { %v519_v7 = vpop.permute.xlu0 %518  ;;  %v515_v8 = vpop.permute.xlu1 %514 }
 0x156   :  { %v1515_v9 = vpop.permute.xlu0 %485  ;;  %v1517_v10 = vpop.permute.xlu1 %481 }
 0x15a   :  { %v1519_v11 = vpop.permute.xlu0 %316  ;;  %v1521_v12 = vpop.permute.xlu1 %452 }
 0x15e   :  { %v1523_v14 = vpop.permute.xlu0 %386  ;;  %v1525_v15 = vpop.permute.xlu1 %448 }
 0x162   :  { %v1529_v17 = vpop.permute.xlu0 %281  ;;  %v1531_v18 = vpop.permute.xlu1 %419 }
 0x166   :  { %v1544_v21 = vpop.permute.xlu1 %415  ;;  %v517_v22 = vpop.permute.xlu0 %516 }
 0x167   :  { %v524_v23 = vsel %vm522_vm3, %v517_v22, %v519_v7  ;;  %v525_v24 = vsel %vm522_vm3, %v515_v8, %v517_v22 }
 0x168   :  { %v543_v25 = vmul.f32 %v1537_v19, %v525_v24  ;;  %v544_v26 = vmul.f32 %v1542_v20, %v524_v23  ;;  %v1656_v23 = vrot.slane %v1603_v46, %v463_v33 }
 0x16a   :  { %v1552_v27 = vpop.permute.xlu1 %382  ;;  %565 = vmatprep.subr.mxu0 %v544_v26  ;;  %v451_v29 = vpop.permute.xlu0 %450 }
 0x16b   :  { %566 = vmatpush1.msra.mxu0 %v543_v25  ;;  %v458_v52 = vsel %vm456_vm4, %v451_v29, %v1521_v12  ;;  %v459_v56 = vsel %vm456_vm4, %v1525_v15, %v451_v29  ;;  %v397_v29 = vsub.s32 3, %v1554_v28 }
 0x16c   :  { %v478_v0 = vmul.f32 %v1609_v48, %v458_v52 }
 0x16e   :  { %v1568_v34 = vpop.permute.xlu1 %349  ;;  %v521_v35 = vpop.permute.xlu0 %520 }
 0x16f   :  { %v523_v39 = vsel %vm522_vm3, %v519_v7, %v521_v35  ;;  %v526_v40 = vsel %vm522_vm3, %v521_v35, %v515_v8  ;;  %v1646_v7 = vrot.slane %v1598_v45, %v463_v33  ;;  %v477_v8 = vmul.f32 %v1606_v47, %v459_v56 }
 0x170   :  { %v545_v41 = vmul.f32 %v1560_v31, %v523_v39  ;;  %v546_v42 = vmul.f32 %v1565_v32, %v526_v40  ;;  %v1707_v56 = vrot.slane %v1598_v45, %v397_v29 }
 0x172   :  { %v484_v49 = vpop.permute.xlu1 %483  ;;  %636 = vmatprep.subr.mxu1 %v546_v42  ;;  %v418_v51 = vpop.permute.xlu0 %417 }
 0x173   :  { %v491_v53 = vsel %vm489_vm5, %v484_v49, %v1515_v9  ;;  %v492_v54 = vsel %vm489_vm5, %v1517_v10, %v484_v49  ;;  %637 = vmatpush1.msra.mxu1 %v545_v41  ;;  %v425_v63 = vsel %vm423_vm6, %v418_v51, %v1531_v18  ;;  %v426_v2 = vsel %vm423_vm6, %v1544_v21, %v418_v51 }
 0x174   :  { %v510_v57 = vmul.f32 %v1590_v43, %v492_v54  ;;  %v511_v58 = vmul.f32 %v1593_v44, %v491_v53  ;;  %v445_v24 = vmul.f32 %v1613_v50, %v425_v63  ;;  %v444_v30 = vmul.f32 %v1636_v62, %v426_v2 }
 0x175   :  { %v1700_v53 = vrot.slane %v1574_v37, %v397_v29  ;;  %v364_v54 = vsub.s32 2, %v1554_v28 }
 0x176   :  { %v422_v4 = vpop.permute.xlu1 %421  ;;  %567 = vmatprep.subr.mxu0 %v511_v58  ;;  %v488_v5 = vpop.permute.xlu0 %487 }
 0x177   :  { %v490_v13 = vsel %vm489_vm5, %v1515_v9, %v488_v5  ;;  %v493_v22 = vsel %vm489_vm5, %v488_v5, %v1517_v10  ;;  %568 = vmatpush1.msra.mxu0 %v510_v57  ;;  %v1664_v9 = vrot.slane %v1598_v45, %v430_v36  ;;  %v1667_v10 = vrot.slane %v1603_v46, %v430_v36 }
 0x178   :  { %v512_v25 = vmul.f32 %v1625_v55, %v490_v13  ;;  %v513_v26 = vmul.f32 %v1633_v59, %v493_v22  ;;  %569 = vmatprep.subr.mxu0 %v478_v0  ;;  %v427_v39 = vsel %vm423_vm6, %v422_v4, %v1544_v21  ;;  %v424_v36 = vsel %vm423_vm6, %v1531_v18, %v422_v4 }
 0x179   :  { %570 = vmatpush1.msra.mxu0 %v477_v8  ;;  %v446_v52 = vmul.f32 %v1664_v9, %v424_v36  ;;  %v331_v57 = vsub.s32 1, %v1554_v28  ;;  %v298_v5 = vsub.s32 0, %v1554_v28  ;;  %v1727_v13 = vrot.slane %v1579_v38, %v364_v54 }
 0x17a   :  { %v1669_v33 = vpop.permute.xlu1 %355  ;;  %571 = vmatprep.subr.mxu0 %v445_v24  ;;  %638 = vmatprep.subr.mxu1 %v513_v26  ;;  %v455_v35 = vpop.permute.xlu0 %454  ;;  %v1730_v22 = vrot.slane %v1574_v37, %v364_v54 }
 0x17b   :  { %v457_v40 = vsel %vm456_vm4, %v1521_v12, %v455_v35  ;;  %v460_v41 = vsel %vm456_vm4, %v455_v35, %v1525_v15  ;;  %572 = vmatpush1.msra.mxu0 %v444_v30  ;;  %639 = vmatpush1.msra.mxu1 %v512_v25  ;;  %v1688_v12 = vrot.slane %v1579_v38, %v397_v29 }
 0x17c   :  { %v479_v42 = vmul.f32 %v1646_v7, %v457_v40  ;;  %v480_v21 = vmul.f32 %v1656_v23, %v460_v41  ;;  %573 = vmatprep.subr.mxu0 %v1466_v1  ;;  %v447_v15 = vmul.f32 %v1667_v10, %v427_v39  ;;  %v1741_v28 = vrot.slane %v1574_v37, %v331_v57 }
 0x17d   :  { %574 = vmatpush1.msra.mxu0 %v1440_v60  ;;  %v1703_v60 = vrot.slane %v1603_v46, %v397_v29  ;;  %v1749_v29 = vrot.slane %v1579_v38, %v298_v5  ;;  %v1755_v35 = vrot.slane %v1574_v37, %v298_v5  ;;  %v1762_v41 = vrot.slane %v1598_v45, %v364_v54 }
 0x17e   :  { %v1692_v49 = vpop.permute.xlu1 %318  ;;  %640 = vmatprep.subr.mxu1 %v480_v21  ;;  %v385_v51 = vpop.permute.xlu0 %384 }
 0x17f   :  { %v393_v18 = vsel %vm390_vm7, %v1552_v27, %v385_v51  ;;  %641 = vmatpush1.msra.mxu1 %v479_v42  ;;  %v392_v58 = vsel %vm390_vm7, %v385_v51, %v1523_v14  ;;  %v327_v26 = vsel %vm324_vm9, %v1519_v11, %v1692_v49 }
 0x180   :  { %v412_v1 = vmul.f32 %v1688_v12, %v393_v18  ;;  %642 = vmatprep.subr.mxu1 %v447_v15  ;;  %v1776_v15 = vrot.slane %v1603_v46, %v331_v57 }
 0x181   :  { %643 = vmatpush1.msra.mxu1 %v446_v52 }
 0x182   :  { %v323_v63 = vpop.permute.xlu1 %322  ;;  %575 = vmatprep.subr.mxu0 %v412_v1  ;;  %644 = vmatprep.subr.mxu1 %v1477_v6  ;;  %v389_v0 = vpop.permute.xlu0 %388 }
 0x183   :  { %v391_v2 = vsel %vm390_vm7, %v1523_v14, %v389_v0  ;;  %v394_v4 = vsel %vm390_vm7, %v389_v0, %v1552_v27  ;;  %645 = vmatpush1.msra.mxu1 %v1443_v61  ;;  %v413_v14 = vmul.f32 %v1707_v56, %v392_v58  ;;  %v361_v61 = vsel %vm357_vm8, %v1669_v33, %v1568_v34 }
 0x184   :  { %v411_v8 = vmul.f32 %v1700_v53, %v394_v4  ;;  %v414_v6 = vmul.f32 %v1703_v60, %v391_v2  ;;  %v1738_v27 = vrot.slane %v1579_v38, %v331_v57  ;;  %v328_v39 = vsel %vm324_vm9, %v323_v63, %v1519_v11  ;;  %v280_v4 = vld [vmem:[%s2080_s4] sm:$0xf] }
 0x185   :  { %v1765_v38 = vrot.slane %v1603_v46, %v364_v54  ;;  %v378_v36 = vmul.f32 %v1730_v22, %v361_v61  ;;  %v1773_v11 = vrot.slane %v1598_v45, %v331_v57  ;;  %v345_v51 = vmul.f32 %v1741_v28, %v328_v39 }
 0x186   :  { %v284_v24 = vpop.permute.xlu1 %283  ;;  %576 = vmatpush1.msra.mxu0 %v411_v8  ;;  %646 = vmatprep.subr.mxu1 %v414_v6  ;;  %v352_v25 = vpop.permute.xlu0 %351  ;;  %v346_v37 = vmul.f32 %v1738_v27, %v327_v26  ;;  %v1798_v8 = vrot.slane %v1598_v45, %v298_v5 }
 0x187   :  { %v360_v30 = vsel %vm357_vm8, %v1568_v34, %v352_v25  ;;  %647 = vmatpush1.msra.mxu1 %v413_v14  ;;  %v294_v34 = vsel %vm291_vm10, %v1529_v17, %v284_v24 }
 0x188   :  { %v379_v40 = vmul.f32 %v1727_v13, %v360_v30  ;;  %v313_v54 = vmul.f32 %v1749_v29, %v294_v34 }
 0x18a   :  { %v288_v42 = vpop.permute.xlu1 %287  ;;  %577 = vmatprep.subr.mxu0 %v379_v40  ;;  %v354_v21 = vpop.permute.xlu0 %353 }
 0x18b   :  { %v295_v52 = vsel %vm291_vm10, %v288_v42, %v1529_v17  ;;  %v358_v18 = vsel %vm357_vm8, %v354_v21, %v1669_v33  ;;  %v359_v1 = vsel %vm357_vm8, %v352_v25, %v354_v21  ;;  %578 = vmatpush1.msra.mxu0 %v378_v36  ;;  %v1792_v17 = vrot.slane %v1603_v46, %v298_v5 }
 0x18c   :  { %v312_v58 = vmul.f32 %v1755_v35, %v295_v52  ;;  %v380_v57 = vmul.f32 %v1762_v41, %v359_v1  ;;  %v381_v0 = vmul.f32 %v1765_v38, %v358_v18  ;;  %579 = vmatprep.subr.mxu0 %v346_v37 }
 0x18d   :  { %580 = vmatpush1.msra.mxu0 %v345_v51 }
 0x18e   :  { %v286_v2 = vpop.permute.xlu1 %285  ;;  %581 = vmatprep.subr.mxu0 %v313_v54  ;;  %648 = vmatprep.subr.mxu1 %v381_v0  ;;  %v321_v33 = vpop.permute.xlu0 %320 }
 0x18f   :  { %v292_v6 = vsel %vm291_vm10, %v286_v2, %v288_v42  ;;  %v325_v14 = vsel %vm324_vm9, %v321_v33, %v323_v63  ;;  %v326_v46 = vsel %vm324_vm9, %v1692_v49, %v321_v33  ;;  %582 = vmatpush1.msra.mxu0 %v312_v58  ;;  %v293_v61 = vsel %vm291_vm10, %v284_v24, %v286_v2 }
 0x190   :  { %v347_v25 = vmul.f32 %v1773_v11, %v326_v46  ;;  %v348_v26 = vmul.f32 %v1776_v15, %v325_v14  ;;  %649 = vmatpush1.msra.mxu1 %v380_v57  ;;  %1179 = vmatmul.mubr.msk.f32.vlgmr.msra.gmra.mxu0 %vm547_vm11, %v280_v4  ;;  %v315_v45 = vmul.f32 %v1792_v17, %v292_v6 }
 0x191   :  { %1022 = vmatprep.mubr.f32.mxu0 %v1205_v3  ;;  %v314_v63 = vmul.f32 %v1798_v8, %v293_v61 }
 0x192   :  { %650 = vmatprep.subr.mxu1 %v348_v26  ;;  %v1214_v26 = vmov 0  }
 0x193   :  { %651 = vmatpush1.msra.mxu1 %v347_v25  ;;  %1197 = vset.pattern.permute.xlu0 %v1214_v26 }
 0x194   :  { %652 = vmatprep.subr.mxu1 %v315_v45  ;;  %1198 = vset.pattern.permute.xlu1 %v1214_v26  ;;  %v694_v45 = vld [vmem:[%s2081_s7] sm:$0xf] }
 0x195   :  { %653 = vmatpush1.msra.mxu1 %v314_v63 }
 0x196   :  { %1180 = vmatmul.mubr.msk.f32.vlgmr.msra.gmra.mxu1 %vm547_vm11, %v280_v4 }
 0x197   :  { %1093 = vmatprep.mubr.f32.mxu1 %v1205_v3 }
 0x250   :  { %v617_v49 = vpop.f32.mrf.mxu0 }
 0x251   :  { %v695_v5 = vsel %vm275_vm2, %v617_v49, 0.0 }
 0x252   :  { %v619_v24 = vpop.f32.mrf.mxu0 }
 0x253   :  { %v696_v30 = vsel %vm275_vm2, %v619_v24, 0.0 }
 0x254   :  { %v697_v39 = vadd.f32 %v696_v30, %v695_v5 }
 0x256   :  { %v688_v40 = vpop.f32.mrf.mxu1 }
 0x257   :  { %v698_v36 = vsel %vm275_vm2, %v688_v40, 0.0 }
 0x258   :  { %v699_v34 = vadd.f32 %v698_v36, %v697_v39  ;;  %v690_v37 = vpop.f32.mrf.mxu1 }
 0x259   :  { %v700_v42 = vsel %vm275_vm2, %v690_v37, 0.0 }
 0x25a   :  { %v701_v21 = vadd.f32 %v700_v42, %v699_v34 }
 0x25c   :  { %702 = vadd.xlane.f32.xlu0 %v701_v21 }
 0x2e5   :  { %v703_v51 = vpop.xlane.xlu0 %702 }
 0x2e6   :  { %v705_v52 = vmul.f32 0.001953125, %v703_v51 }
 0x2e8   :  { %v706_v18 = vsub.f32 %v617_v49, %v705_v52  ;;  %v707_v3 = vsub.f32 %v619_v24, %v705_v52  ;;  %v708_v1 = vsub.f32 %v688_v40, %v705_v52  ;;  %v709_v54 = vsub.f32 %v690_v37, %v705_v52  ;;  %v693_v24 = vld [vmem:[%s2082_s6] sm:$0xf] }
 0x2ea   :  { %v710_v58 = vmul.f32 %v706_v18, %v706_v18  ;;  %v711_v57 = vmul.f32 %v707_v3, %v707_v3  ;;  %v712_v0 = vmul.f32 %v708_v1, %v708_v1  ;;  %v713_v2 = vmul.f32 %v709_v54, %v709_v54 }
 0x2ec   :  { %v714_v33 = vsel %vm275_vm2, %v710_v58, 0.0  ;;  %v715_v4 = vsel %vm275_vm2, %v711_v57, 0.0  ;;  %v717_v14 = vsel %vm275_vm2, %v712_v0, 0.0  ;;  %v719_v61 = vsel %vm275_vm2, %v713_v2, 0.0 }
 0x2ed   :  { %v716_v6 = vadd.f32 %v715_v4, %v714_v33 }
 0x2ef   :  { %v718_v46 = vadd.f32 %v717_v14, %v716_v6 }
 0x2f1   :  { %v720_v25 = vadd.f32 %v719_v61, %v718_v46 }
 0x2f3   :  { %721 = vadd.xlane.f32.xlu1 %v720_v25 }
 0x304   :  { %738 = vperm.xlu1 %1198, %v694_v45  }
 0x37c   :  { %v722_v63 = vpop.xlane.xlu1 %721 }
 0x37d   :  { %v723_v49 = vmul.f32 0.001953125, %v722_v63 }
 0x37f   :  { %v724_v5 = vadd.f32 1e-05, %v723_v49 }
 0x380   :  { %v739_v36 = vpop.permute.xlu1 %738 }
 0x381   :  { %1201 = vrsqrt.f32 %v724_v5 }
 0x38e   :  { %v1202_v30 = vpop.eup %1201 }
 0x38f   :  { %v726_v39 = vmul.f32 %v1202_v30, %v693_v24 }
 0x391   :  { %729 = vperm.xlu0 %1197, %v726_v39  }
 0x40c   :  { %v730_v40 = vpop.permute.xlu0 %729 }
 0x40d   :  { %v733_v34 = vmul.f32 %v730_v40, %v707_v3  ;;  %v734_v37 = vmul.f32 %v730_v40, %v708_v1  ;;  %v732_v51 = vmul.f32 %v730_v40, %v706_v18  ;;  %v735_v3 = vmul.f32 %v730_v40, %v709_v54 }
 0x40f   :  { %v742_v42 = vadd.f32 %v739_v36, %v733_v34  ;;  %v743_v21 = vadd.f32 %v739_v36, %v734_v37  ;;  %v741_v57 = vadd.f32 %v739_v36, %v732_v51  ;;  %v744_v18 = vadd.f32 %v739_v36, %v735_v3 }
 0x411   :  { %v1831_v52 = vmax.f32 %v742_v42, 0.0  ;;  %v1833_v58 = vmax.f32 %v743_v21, 0.0  ;;  %v1843_v1 = vmax.f32 %v741_v57, 0.0  ;;  %v1853_v0 = vmax.f32 %v744_v18, 0.0 }
 0x413   :  { %818 = vrot.lane.b32.xlu0 %v1833_v58, %s1212_s26  ;;  %848 = vrot.lane.b32.xlu1 %v1831_v52, %s1207_s22 }
 0x417   :  { %834 = vrot.lane.b32.xlu0 %v1833_v58, %s1209_s23  ;;  %850 = vrot.lane.b32.xlu1 %v1833_v58, %s1207_s22 }
 0x41b   :  { %814 = vrot.lane.b32.xlu0 %v1843_v1, %s1212_s26  ;;  %846 = vrot.lane.b32.xlu1 %v1843_v1, %s1207_s22 }
 0x41f   :  { %798 = vrot.lane.b32.xlu0 %v1843_v1, %s1210_s24  ;;  %864 = vrot.lane.b32.xlu1 %v1831_v52, %s1206_s21 }
 0x423   :  { %852 = vrot.lane.b32.xlu0 %v1853_v0, %s1207_s22  ;;  %866 = vrot.lane.b32.xlu1 %v1833_v58, %s1206_s21 }
 0x427   :  { %868 = vrot.lane.b32.xlu0 %v1853_v0, %s1206_s21  ;;  %816 = vrot.lane.b32.xlu1 %v1831_v52, %s1212_s26 }
 0x42b   :  { %768 = vrot.lane.b32.xlu0 %v1831_v52, %s1208_s0  ;;  %832 = vrot.lane.b32.xlu1 %v1831_v52, %s1209_s23 }
 0x42f   :  { %784 = vrot.lane.b32.xlu0 %v1831_v52, %s1213_s27  ;;  %862 = vrot.lane.b32.xlu1 %v1843_v1, %s1206_s21 }
 0x433   :  { %836 = vrot.lane.b32.xlu0 %v1853_v0, %s1209_s23  ;;  %830 = vrot.lane.b32.xlu1 %v1843_v1, %s1209_s23 }
 0x437   :  { %788 = vrot.lane.b32.xlu0 %v1853_v0, %s1213_s27  ;;  %800 = vrot.lane.b32.xlu1 %v1831_v52, %s1210_s24 }
 0x43b   :  { %752 = vrot.lane.b32.xlu0 %v1831_v52, %s1211_s25  ;;  %804 = vrot.lane.b32.xlu1 %v1853_v0, %s1210_s24 }
 0x43f   :  { %756 = vrot.lane.b32.xlu0 %v1853_v0, %s1211_s25  ;;  %766 = vrot.lane.b32.xlu1 %v1843_v1, %s1208_s0 }
 0x443   :  { %786 = vrot.lane.b32.xlu0 %v1833_v58, %s1213_s27  ;;  %782 = vrot.lane.b32.xlu1 %v1843_v1, %s1213_s27 }
 0x447   :  { %820 = vrot.lane.b32.xlu1 %v1853_v0, %s1212_s26 }
 0x44b   :  { %772 = vrot.lane.b32.xlu1 %v1853_v0, %s1208_s0 }
 0x44f   :  { %750 = vrot.lane.b32.xlu1 %v1843_v1, %s1211_s25 }
 0x453   :  { %802 = vrot.lane.b32.xlu1 %v1833_v58, %s1210_s24 }
 0x457   :  { %770 = vrot.lane.b32.xlu1 %v1833_v58, %s1208_s0 }
 0x45b   :  { %754 = vrot.lane.b32.xlu1 %v1833_v58, %s1211_s25 }
 0x485   :  { %v1903_v54 = vpop.permute.xlu0 %818  ;;  %v849_v2 = vpop.permute.xlu1 %848 }
 0x489   :  { %v835_v33 = vpop.permute.xlu0 %834  ;;  %v851_v4 = vpop.permute.xlu1 %850 }
 0x48a   :  { %v855_v24 = vsel %vm489_vm5, %v849_v2, %v851_v4 }
 0x48b   :  { %v859_v37 = vmul.f32 %v855_v24, %v1593_v44 }
 0x48d   :  { %v1905_v6 = vpop.permute.xlu0 %814  ;;  %v847_v14 = vpop.permute.xlu1 %846 }
 0x48e   :  { %v856_v30 = vsel %vm489_vm5, %v847_v14, %v849_v2 }
 0x48f   :  { %v858_v21 = vmul.f32 %v856_v30, %v1590_v43 }
 0x491   :  { %v1907_v46 = vpop.permute.xlu0 %798  ;;  %v865_v61 = vpop.permute.xlu1 %864 }
 0x495   :  { %v853_v25 = vpop.permute.xlu0 %852  ;;  %v867_v26 = vpop.permute.xlu1 %866 }
 0x496   :  { %v871_v45 = vsel %vm522_vm3, %v865_v61, %v867_v26  ;;  %v854_v36 = vsel %vm489_vm5, %v851_v4, %v853_v25  ;;  %v857_v34 = vsel %vm489_vm5, %v853_v25, %v847_v14 }
 0x497   :  { %v875_v63 = vmul.f32 %v1542_v20, %v871_v45  ;;  %v860_v57 = vmul.f32 %v854_v36, %v1625_v55  ;;  %v861_v3 = vmul.f32 %v857_v34, %v1633_v59  ;;  %v919_v45 = vrot.slane %v859_v37, 4 }
 0x499   :  { %v869_v49 = vpop.permute.xlu0 %868  ;;  %1181 = vmatprep.subr.msk.mxu0 %vm275_vm2, %v875_v63  ;;  %v817_v5 = vpop.permute.xlu1 %816  ;;  %v918_v63 = vrot.slane %v858_v21, 4  ;;  %v921_v24 = vrot.slane %v861_v3, 4 }
 0x49a   :  { %v823_v42 = vsel %vm423_vm6, %v817_v5, %v1903_v54  ;;  %v824_v51 = vsel %vm423_vm6, %v1905_v6, %v817_v5  ;;  %v870_v18 = vsel %vm522_vm3, %v867_v26, %v869_v49  ;;  %v920_v5 = vrot.slane %v860_v57, 4 }
 0x49b   :  { %v827_v14 = vmul.f32 %v823_v42, %v1613_v50  ;;  %v826_v55 = vmul.f32 %v824_v51, %v1636_v62 }
 0x49d   :  { %v1917_v39 = vpop.permute.xlu0 %768  ;;  %v833_v40 = vpop.permute.xlu1 %832 }
 0x49e   :  { %v839_v20 = vsel %vm456_vm4, %v833_v40, %v835_v33 }
 0x49f   :  { %v843_v2 = vmul.f32 %v839_v20, %v1609_v48  ;;  %v876_v48 = vmul.f32 %v1560_v31, %v870_v18 }
 0x4a1   :  { %v1938_v44 = vpop.permute.xlu0 %784  ;;  %v863_v4 = vpop.permute.xlu1 %862 }
 0x4a2   :  { %v872_v43 = vsel %vm522_vm3, %v863_v4, %v865_v61  ;;  %v873_v25 = vsel %vm522_vm3, %v869_v49, %v863_v4  ;;  %v939_v61 = vsel %vm275_vm2, %v843_v2, %v919_v45  ;;  %v907_v49 = vrot.slane %v827_v14, 4 }
 0x4a3   :  { %v874_v59 = vmul.f32 %v1537_v19, %v872_v43  ;;  %v877_v26 = vmul.f32 %v1565_v32, %v873_v25  ;;  %v906_v32 = vrot.slane %v826_v55, 4 }
 0x4a4   :  { %v935_v21 = vsel %vm275_vm2, %v1831_v52, %v907_v49 }
 0x4a5   :  { %v837_v30 = vpop.permute.xlu0 %836  ;;  %1182 = vmatpush1.msk.msra.mxu0 %vm275_vm2, %v874_v59  ;;  %1184 = vmatprep.subr.msk.mxu1 %vm275_vm2, %v877_v26  ;;  %v831_v50 = vpop.permute.xlu1 %830 }
 0x4a6   :  { %v838_v62 = vsel %vm456_vm4, %v835_v33, %v837_v30  ;;  %v840_v19 = vsel %vm456_vm4, %v831_v50, %v833_v40  ;;  %v841_v31 = vsel %vm456_vm4, %v837_v30, %v831_v50  ;;  %982 = vmatprep.subr.mxu0 %v939_v61  ;;  %1185 = vmatpush1.msk.msra.mxu1 %vm275_vm2, %v876_v48 }
 0x4a7   :  { %v844_v36 = vmul.f32 %v838_v62, %v1646_v7  ;;  %v842_v34 = vmul.f32 %v840_v19, %v1606_v47  ;;  %v845_v20 = vmul.f32 %v841_v31, %v1656_v23  ;;  %v934_v47 = vsel %vm275_vm2, %v1843_v1, %v906_v32 }
 0x4a9   :  { %v1962_v37 = vpop.permute.xlu1 %800  ;;  %v938_v33 = vsel %vm275_vm2, %v842_v34, %v918_v63  ;;  %v941_v42 = vsel %vm275_vm2, %v845_v20, %v921_v24  ;;  %v940_v40 = vsel %vm275_vm2, %v844_v36, %v920_v5  ;;  %v789_v57 = vpop.permute.xlu0 %788  ;;  %v749_v34 = vld [vmem:[%s2083_s5] sm:$0xf] }
 0x4aa   :  { %983 = vmatpush1.msra.mxu0 %v938_v33  ;;  %1053 = vmatprep.subr.mxu1 %v941_v42  ;;  %v808_v23 = vsel %vm390_vm7, %v1907_v46, %v1962_v37 }
 0x4ab   :  { %984 = vmatprep.subr.mxu0 %v935_v21  ;;  %1054 = vmatpush1.msra.mxu1 %v940_v40  ;;  %v811_v52 = vmul.f32 %v808_v23, %v1688_v12 }
 0x4ac   :  { %985 = vmatpush1.msra.mxu0 %v934_v47 }
 0x4ad   :  { %v805_v7 = vpop.permute.xlu1 %804  ;;  %v895_v14 = vrot.slane %v811_v52, 4  ;;  %v1985_v43 = vpop.permute.xlu0 %752 }
 0x4ae   :  { %v809_v51 = vsel %vm390_vm7, %v805_v7, %v1907_v46 }
 0x4af   :  { %v810_v18 = vmul.f32 %v809_v51, %v1700_v53 }
 0x4b1   :  { %v767_v3 = vpop.permute.xlu1 %766  ;;  %v894_v25 = vrot.slane %v810_v18, 4  ;;  %v757_v63 = vpop.permute.xlu0 %756 }
 0x4b5   :  { %v783_v2 = vpop.permute.xlu1 %782 }
 0x4b6   :  { %v792_v1 = vsel %vm357_vm8, %v783_v2, %v1938_v44  ;;  %v793_v4 = vsel %vm357_vm8, %v789_v57, %v783_v2 }
 0x4b7   :  { %v794_v46 = vmul.f32 %v793_v4, %v1730_v22  ;;  %v795_v45 = vmul.f32 %v792_v1, %v1727_v13  ;;  %v776_v13 = vsel %vm324_vm9, %v767_v3, %v1917_v39 }
 0x4b8   :  { %v779_v50 = vmul.f32 %v776_v13, %v1738_v27  ;;  %v787_v27 = vpop.permute.xlu0 %786 }
 0x4b9   :  { %v821_v55 = vpop.permute.xlu1 %820  ;;  %v931_v12 = vsel %vm275_vm2, %v795_v45, %v895_v14  ;;  %v930_v53 = vsel %vm275_vm2, %v794_v46, %v894_v25  ;;  %v790_v20 = vsel %vm357_vm8, %v787_v27, %v789_v57  ;;  %v791_v33 = vsel %vm357_vm8, %v1938_v44, %v787_v27 }
 0x4ba   :  { %v822_v59 = vsel %vm423_vm6, %v1903_v54, %v821_v55  ;;  %v825_v26 = vsel %vm423_vm6, %v821_v55, %v1905_v6  ;;  %986 = vmatprep.subr.mxu0 %v931_v12  ;;  %v883_v19 = vrot.slane %v779_v50, 4  ;;  %v796_v21 = vmul.f32 %v791_v33, %v1762_v41 }
 0x4bb   :  { %v828_v48 = vmul.f32 %v822_v59, %v1664_v9  ;;  %v829_v22 = vmul.f32 %v825_v26, %v1667_v10  ;;  %987 = vmatpush1.msra.mxu0 %v930_v53  ;;  %v797_v47 = vmul.f32 %v790_v20, %v1765_v38 }
 0x4bd   :  { %v908_v5 = vrot.slane %v828_v48, 4  ;;  %v909_v24 = vrot.slane %v829_v22, 4  ;;  %v773_v30 = vpop.permute.xlu1 %772 }
 0x4be   :  { %v777_v54 = vsel %vm324_vm9, %v773_v30, %v767_v3 }
 0x4bf   :  { %v778_v6 = vmul.f32 %v777_v54, %v1741_v28  ;;  %v937_v9 = vsel %vm275_vm2, %v1853_v0, %v909_v24  ;;  %v936_v10 = vsel %vm275_vm2, %v1833_v58, %v908_v5 }
 0x4c0   :  { %1055 = vmatprep.subr.mxu1 %v937_v9 }
 0x4c1   :  { %1056 = vmatpush1.msra.mxu1 %v936_v10  ;;  %v751_v61 = vpop.permute.xlu1 %750  ;;  %v882_v31 = vrot.slane %v778_v6, 4 }
 0x4c2   :  { %v760_v49 = vsel %vm291_vm10, %v751_v61, %v1985_v43  ;;  %v761_v62 = vsel %vm291_vm10, %v757_v63, %v751_v61 }
 0x4c3   :  { %v762_v28 = vmul.f32 %v761_v62, %v1755_v35  ;;  %v763_v0 = vmul.f32 %v760_v49, %v1749_v29  ;;  %v1101_v62 = vld [vmem:[%s2084_s9] sm:$0xf] }
 0x4c5   :  { %v803_v32 = vpop.permute.xlu1 %802  ;;  %v927_v58 = vsel %vm275_vm2, %v763_v0, %v883_v19  ;;  %v926_v36 = vsel %vm275_vm2, %v762_v28, %v882_v31  ;;  %v1100_v28 = vld [vmem:[%s2085_s8] sm:$0xf] }
 0x4c6   :  { %v806_v29 = vsel %vm390_vm7, %v803_v32, %v805_v7  ;;  %v807_v35 = vsel %vm390_vm7, %v1962_v37, %v803_v32  ;;  %988 = vmatprep.subr.mxu0 %v927_v58 }
 0x4c7   :  { %v812_v42 = vmul.f32 %v807_v35, %v1707_v56  ;;  %v813_v40 = vmul.f32 %v806_v29, %v1703_v60  ;;  %989 = vmatpush1.msra.mxu0 %v926_v36 }
 0x4c8   :  { %1183 = vmatmul.mubr.msk.f32.vlgmr.msra.gmra.mxu0 %vm942_vm12, %v749_v34 }
 0x4c9   :  { %v896_v44 = vrot.slane %v812_v42, 4  ;;  %v897_v23 = vrot.slane %v813_v40, 4  ;;  %v771_v51 = vpop.permute.xlu1 %770 }
 0x4ca   :  { %v774_v7 = vsel %vm324_vm9, %v771_v51, %v773_v30  ;;  %v775_v37 = vsel %vm324_vm9, %v1917_v39, %v771_v51 }
 0x4cb   :  { %v780_v56 = vmul.f32 %v775_v37, %v1773_v11  ;;  %v781_v60 = vmul.f32 %v774_v7, %v1776_v15  ;;  %v933_v57 = vsel %vm275_vm2, %v797_v47, %v897_v23  ;;  %v932_v41 = vsel %vm275_vm2, %v796_v21, %v896_v44 }
 0x4cc   :  { %1057 = vmatprep.subr.mxu1 %v933_v57 }
 0x4cd   :  { %1058 = vmatpush1.msra.mxu1 %v932_v41  ;;  %v755_v38 = vpop.permute.xlu1 %754  ;;  %v884_v18 = vrot.slane %v780_v56, 4  ;;  %v885_v39 = vrot.slane %v781_v60, 4 }
 0x4ce   :  { %v758_v3 = vsel %vm291_vm10, %v755_v38, %v757_v63  ;;  %v759_v52 = vsel %vm291_vm10, %v1985_v43, %v755_v38 }
 0x4cf   :  { %v764_v11 = vmul.f32 %v759_v52, %v1798_v8  ;;  %v765_v15 = vmul.f32 %v758_v3, %v1792_v17 }
 0x4d1   :  { %v929_v2 = vsel %vm275_vm2, %v765_v15, %v885_v39  ;;  %v928_v1 = vsel %vm275_vm2, %v764_v11, %v884_v18 }
 0x4d2   :  { %1059 = vmatprep.subr.mxu1 %v929_v2 }
 0x4d3   :  { %1060 = vmatpush1.msra.mxu1 %v928_v1 }
 0x4d4   :  { %1186 = vmatmul.mubr.msk.f32.vlgmr.msra.gmra.mxu1 %vm942_vm12, %v749_v34 }
 0x588   :  { %v1024_v4 = vpop.f32.mrf.mxu0 }
 0x589   :  { %v1102_v25 = vsel %vm275_vm2, %v1024_v4, 0.0 }
 0x58a   :  { %v1026_v14 = vpop.f32.mrf.mxu0 }
 0x58b   :  { %v1103_v16 = vsel %vm275_vm2, %v1026_v14, 0.0 }
 0x58c   :  { %v1104_v43 = vadd.f32 %v1103_v16, %v1102_v25 }
 0x594   :  { %v1095_v46 = vpop.f32.mrf.mxu1 }
 0x595   :  { %v1105_v8 = vsel %vm275_vm2, %v1095_v46, 0.0 }
 0x596   :  { %v1106_v45 = vadd.f32 %v1105_v8, %v1104_v43  ;;  %v1097_v17 = vpop.f32.mrf.mxu1 }
 0x597   :  { %v1107_v55 = vsel %vm275_vm2, %v1097_v17, 0.0 }
 0x598   :  { %v1108_v12 = vadd.f32 %v1107_v55, %v1106_v45 }
 0x59a   :  { %1109 = vadd.xlane.f32.xlu0 %v1108_v12 }
 0x623   :  { %v1110_v53 = vpop.xlane.xlu0 %1109 }
 0x624   :  { %v1111_v59 = vmul.f32 0.001953125, %v1110_v53 }
 0x626   :  { %v1112_v26 = vsub.f32 %v1024_v4, %v1111_v59  ;;  %v1113_v48 = vsub.f32 %v1026_v14, %v1111_v59  ;;  %v1114_v22 = vsub.f32 %v1095_v46, %v1111_v59  ;;  %v1115_v13 = vsub.f32 %v1097_v17, %v1111_v59 }
 0x628   :  { %v1116_v63 = vmul.f32 %v1112_v26, %v1112_v26  ;;  %v1117_v5 = vmul.f32 %v1113_v48, %v1113_v48  ;;  %v1118_v24 = vmul.f32 %v1114_v22, %v1114_v22  ;;  %v1119_v30 = vmul.f32 %v1115_v13, %v1115_v13 }
 0x62a   :  { %v1120_v54 = vsel %vm275_vm2, %v1116_v63, 0.0  ;;  %v1121_v50 = vsel %vm275_vm2, %v1117_v5, 0.0  ;;  %v1123_v9 = vsel %vm275_vm2, %v1118_v24, 0.0  ;;  %v1125_v61 = vsel %vm275_vm2, %v1119_v30, 0.0 }
 0x62b   :  { %v1122_v6 = vadd.f32 %v1121_v50, %v1120_v54 }
 0x62d   :  { %v1124_v10 = vadd.f32 %v1123_v9, %v1122_v6 }
 0x62f   :  { %v1126_v49 = vadd.f32 %v1125_v61, %v1124_v10 }
 0x631   :  { %1127 = vadd.xlane.f32.xlu1 %v1126_v49 }
 0x642   :  { %1144 = vperm.xlu1 %1198, %v1101_v62  }
 0x6ba   :  { %v1128_v19 = vpop.xlane.xlu1 %1127 }
 0x6bb   :  { %v1129_v27 = vmul.f32 0.001953125, %v1128_v19 }
 0x6bd   :  { %v1130_v31 = vadd.f32 1e-05, %v1129_v27 }
 0x6be   :  { %v1145_v29 = vpop.permute.xlu1 %1144 }
 0x6bf   :  { %1203 = vrsqrt.f32 %v1130_v31 }
 0x6cc   :  { %v1204_v0 = vpop.eup %1203 }
 0x6cd   :  { %v1132_v32 = vmul.f32 %v1204_v0, %v1100_v28 }
 0x6cf   :  { %1135 = vperm.xlu0 %1197, %v1132_v32  }
 0x74a   :  { %v1136_v58 = vpop.permute.xlu0 %1135 }
 0x74b   :  { %v1138_v36 = vmul.f32 %v1136_v58, %v1112_v26  ;;  %v1139_v34 = vmul.f32 %v1136_v58, %v1113_v48  ;;  %v1140_v20 = vmul.f32 %v1136_v58, %v1114_v22  ;;  %v1141_v33 = vmul.f32 %v1136_v58, %v1115_v13 }
 0x74d   :  { %v1147_v35 = vadd.f32 %v1145_v29, %v1138_v36  ;;  %v1148_v42 = vadd.f32 %v1145_v29, %v1139_v34  ;;  %v1149_v40 = vadd.f32 %v1145_v29, %v1140_v20  ;;  %v1150_v21 = vadd.f32 %v1145_v29, %v1141_v33 }
 0x74f   :  { %v1151_v47 = vmax.f32 %v1147_v35, 0.0  ;;  %v1152_v44 = vmax.f32 %v1148_v42, 0.0  ;;  %v1153_v23 = vmax.f32 %v1149_v40, 0.0  ;;  %v1154_v51 = vmax.f32 %v1150_v21, 0.0 }
 0x751   :  { %v1159_v7 = vcombine.low %v1151_v47, %v1152_v44  ;;  %v1160_v37 = vcombine.low %v1153_v23, %v1154_v51 }
 0x753   :  { %1163 = vst [vmem:[%s2086_s10] sm:$0xff] %v1159_v7  ;;  %1164 = vst [vmem:[%s2086_s10 + $0x8] sm:$0xff] %v1160_v37 }

</bundles_post_ra>
